<compile_context>
chip_gen: v6e
topology: v6e:2x2x1
jax: 0.10.0
libtpu: 0.0.40
codegen_flags: <defaults>
</compile_context>

<pallas_src>
import functools
import math

import jax
import jax.numpy as jnp
from jax.experimental import pallas as pl
from jax.experimental.pallas import tpu as pltpu


def make_positional_encoding(d_model, max_len=5000):
    """Same table as the PyTorch module's `pe` buffer (shape (max_len, d_model))."""
    if d_model % 2 != 0:
        raise ValueError("d_model must be even (same constraint as the PyTorch module)")
    position = jnp.arange(max_len, dtype=jnp.float32)[:, None]            # (L, 1)
    div_term = jnp.exp(
        jnp.arange(0, d_model, 2, dtype=jnp.float32)
        * (-jnp.log(10000.0) / d_model))                                   # (D/2,)
    ang = position * div_term                                              # (L, D/2)
    pe = jnp.zeros((max_len, d_model), jnp.float32)
    pe = pe.at[:, 0::2].set(jnp.sin(ang))
    pe = pe.at[:, 1::2].set(jnp.cos(ang))
    return pe


def _pos_enc_kernel(seed_ref, x_ref, pe_ref, o_ref, *, p, train, block_batch):
    # x block: (BB, TS, LD), pe block: (TS, LD). Compute in the input dtype
    # (bf16 fast path on v6e/v7x, exact f32 otherwise).
    y = x_ref[...] + pe_ref[...][None, :, :]

    if train and p > 0.0:
        # Counter-based hash PRNG, trimmed to a single mul + xorshift round
        # (adequate mixing for dropout masks; keeps the kernel HBM-bound).
        s_tile = pl.program_id(0).astype(jnp.uint32)
        b_tile = pl.program_id(1).astype(jnp.uint32)
        salt = (seed_ref[0].astype(jnp.uint32) * jnp.uint32(0x9E3779B1)
                + s_tile * jnp.uint32(0x85EBCA77)
                + b_tile * jnp.uint32(0xC2B2AE3D))
        rows = jax.lax.broadcasted_iota(jnp.int32, y.shape, 1).astype(jnp.uint32)
        cols = jax.lax.broadcasted_iota(jnp.int32, y.shape, 2).astype(jnp.uint32)
        h = salt + rows * jnp.uint32(0x27D4EB2F) + cols * jnp.uint32(0x165667B1)
        if block_batch > 1:
            bidx = jax.lax.broadcasted_iota(jnp.int32, y.shape, 0).astype(jnp.uint32)
            h = h + bidx * jnp.uint32(0x2545F491)
        h = h ^ (h >> 16)
        h = h * jnp.uint32(0x7FEB352D)
        h = h ^ (h >> 15)
        # keep w.p. (1 - p); clamp threshold so p ~ 1.0 cannot wrap to 0
        thr = jnp.uint32(min(int(round(p * 4294967296.0)), 0xFFFFFFFF))
        keep = h >= thr
        y = jnp.where(keep, y * (1.0 / (1.0 - p)), 0.0)

    o_ref[...] = y.astype(o_ref.dtype)


def _pick_tiles(batch, seq_rows, lane_dim, itemsize, target_bytes):
    """Byte-budgeted (batch_block, seq_rows_block) tile sizes."""
    row_bytes = lane_dim * itemsize
    ts = target_bytes // row_bytes
    if ts >= seq_rows:
        ts = seq_rows
    else:
        ts = min(max(8, (ts // 8) * 8), seq_rows)
    # Fold the whole batch into one block while blocks stay comfortably small.
    if batch * ts * row_bytes <= 2 * target_bytes:
        bb = batch
    else:
        bb = 1
    return int(bb), int(ts)


def positional_enc_forward(x, pe, *, dropout_p=0.1, train=False, seed=0,
                           target_block_bytes=2 << 20):
    """x: (B, S, D);  pe: (max_len, D) table from make_positional_encoding."""
    B, S, D = x.shape
    if train and not (0.0 <= dropout_p < 1.0):
        raise ValueError("dropout_p must satisfy 0 <= p < 1 in training mode")

    # pe[:S], pre-cast to the compute dtype so the kernel avoids per-element casts.
    pe_s = jax.lax.slice(pe, (0, 0), (S, D)).astype(x.dtype)

    # Lane density: fold k sequence rows into the lane axis so the last block
    # dim is a multiple of 128 (unmasked stores).  No-op when D % 128 == 0.
    k = 128 // math.gcd(D, 128)
    if k > 1 and S % k == 0:
        Sr, LD = S // k, k * D
    else:
        # TODO(synk): pad S to a multiple of k to regain lane density when S % k != 0.
        k, Sr, LD = 1, S, D

    x_r = x.reshape(B, Sr, LD)
    pe_r = pe_s.reshape(Sr, LD)

    itemsize = x.dtype.itemsize
    bb, ts = _pick_tiles(B, Sr, LD, itemsize, int(target_block_bytes))
    grid = (pl.cdiv(Sr, ts), pl.cdiv(B, bb))   # seq outer, batch inner: pe tile
                                               # stays VMEM-resident across batch

    # x + out double-buffered, pe double-buffered, plus headroom for elementwise temps.
    est_vmem = (4 * bb * ts * LD + 2 * ts * LD) * itemsize + (8 << 20)
    vmem_limit = int(min(max(est_vmem, 32 << 20), 48 << 20))

    kernel = functools.partial(_pos_enc_kernel, p=float(dropout_p),
                               train=bool(train), block_batch=bb)
    seed_arr = jnp.asarray([seed], dtype=jnp.int32)

    out = pl.pallas_call(
        kernel,
        out_shape=jax.ShapeDtypeStruct((B, Sr, LD), x.dtype),
        grid=grid,
        in_specs=[
            pl.BlockSpec(memory_space=pltpu.MemorySpace.SMEM),        # seed
            pl.BlockSpec((bb, ts, LD), lambda s, b: (b, s, 0)),       # x (folded)
            pl.BlockSpec((ts, LD), lambda s, b: (s, 0)),              # pe (folded)
        ],
        out_specs=pl.BlockSpec((bb, ts, LD), lambda s, b: (b, s, 0)),
        input_output_aliases={1: 0},   # kernel fully overwrites every element of x
        compiler_params=pltpu.CompilerParams(
            dimension_semantics=("parallel", "parallel"),
            vmem_limit_bytes=vmem_limit),
    )(seed_arr, x_r, pe_r)
    return out.reshape(B, S, D)


if __name__ == "__main__":
    # Small shapes consistent with the module: batch=2, seq=8, d_model=32.
    B, S, D, MAX_LEN = 2, 8, 32, 64
    P_DROP = 0.1

    key = jax.random.PRNGKey(0)
    x = jax.random.normal(key, (B, S, D), jnp.float32)
    pe = make_positional_encoding(D, max_len=MAX_LEN)
    ref = x + pe[None, :S, :]

    # Eval path: dropout is identity -> must match x + pe exactly.
    out_eval = jax.block_until_ready(
        positional_enc_forward(x, pe, dropout_p=P_DROP, train=False))
    assert out_eval.shape == (B, S, D)
    assert jnp.allclose(out_eval, ref, atol=1e-5, rtol=1e-5)

    # Train path: each element is either dropped (0) or kept & scaled by 1/(1-p).
    out_train = jax.block_until_ready(
        positional_enc_forward(x, pe, dropout_p=P_DROP, train=True, seed=123))
    assert out_train.shape == (B, S, D)
    scaled = ref / (1.0 - P_DROP)
    ok = (jnp.isclose(out_train, 0.0, atol=1e-6)
          | jnp.isclose(out_train, scaled, atol=1e-4, rtol=1e-4))
    assert bool(jnp.all(ok))

    print("KERNEL_OK")
</pallas_src>

<mosaic_0001>
module attributes {stable_mosaic.version = 11 : i64} {
  func.func @_pos_enc_kernel(%arg0: i32, %arg1: i32, %arg2: memref<1xi32, #tpu.memory_space<smem>>, %arg3: memref<2x2x128xf32, #tpu.memory_space<vmem>>, %arg4: memref<2x128xf32, #tpu.memory_space<vmem>>, %arg5: memref<2x2x128xf32, #tpu.memory_space<vmem>>) attributes {dimension_semantics = [#tpu.dimension_semantics<parallel>, #tpu.dimension_semantics<parallel>], iteration_bounds = array<i64: 1, 1>, scalar_prefetch = 0 : i64, scratch_operands = 0 : i64, tpu.core_type = #tpu.core_type<tc>, window_params = [{transform_indices = @transform_0, window_bounds = array<i64: 1>}, {transform_indices = @transform_1, window_bounds = array<i64: 2, 2, 128>}, {transform_indices = @transform_2, window_bounds = array<i64: 2, 128>}, {transform_indices = @transform_3, window_bounds = array<i64: 2, 2, 128>}]} {
    %c0 = arith.constant 0 : index
    %c0_0 = arith.constant 0 : index
    %c0_1 = arith.constant 0 : index
    %0 = vector.load %arg3[%c0, %c0_0, %c0_1] : memref<2x2x128xf32, #tpu.memory_space<vmem>>, vector<2x2x128xf32>
    %c0_2 = arith.constant 0 : index
    %c0_3 = arith.constant 0 : index
    %1 = vector.load %arg4[%c0_2, %c0_3] : memref<2x128xf32, #tpu.memory_space<vmem>>, vector<2x128xf32>
    %2 = vector.shape_cast %1 : vector<2x128xf32> to vector<1x2x128xf32>
    %3 = vector.broadcast %2 : vector<1x2x128xf32> to vector<2x2x128xf32>
    %4 = arith.addf %0, %3 : vector<2x2x128xf32>
    %c0_4 = arith.constant 0 : index
    %c0_5 = arith.constant 0 : index
    %c0_6 = arith.constant 0 : index
    %5 = vector.load %arg5[%c0_4, %c0_5, %c0_6] : memref<2x2x128xf32, #tpu.memory_space<vmem>>, vector<2x2x128xf32>
    tpu.vector_store %arg5[%c0_4, %c0_5, %c0_6], %4 {strides = array<i32>} : memref<2x2x128xf32, #tpu.memory_space<vmem>>, vector<2x2x128xf32>,
    return
  }
  func.func @transform_0(%arg0: i32, %arg1: i32) -> i32 {
    %c0_i32 = arith.constant 0 : i32
    %c0_i32_0 = arith.constant 0 : i32
    return %c0_i32 : i32
  }
  func.func @transform_1(%arg0: i32, %arg1: i32) -> (i32, i32, i32) {
    %c0_i32 = arith.constant 0 : i32
    %c0_i32_0 = arith.constant 0 : i32
    return %arg1, %arg0, %c0_i32 : i32, i32, i32
  }
  func.func @transform_2(%arg0: i32, %arg1: i32) -> (i32, i32) {
    %c0_i32 = arith.constant 0 : i32
    %c0_i32_0 = arith.constant 0 : i32
    return %arg0, %c0_i32 : i32, i32
  }
  func.func @transform_3(%arg0: i32, %arg1: i32) -> (i32, i32, i32) {
    %c0_i32 = arith.constant 0 : i32
    %c0_i32_0 = arith.constant 0 : i32
    return %arg1, %arg0, %c0_i32 : i32, i32, i32
  }
}

</mosaic_0001>

<bundles_post_ra>
// kernel: tpu_custom_call.1
= control target key start
LH: loop header
LB: loop body
LE: loop exit
PB: predicated region body
PF: predicated region fallthrough
CT: control target
= control target key end

     0   :  { %9 = vsyncpa [#allocation4], 0  ;;  %s135_s0 = inlined_call_operand.<no memory space> [shape: s32[1], index: 0, kind: input, shape index: {}]   ;;  %s136_s1 = inlined_call_operand.hbm [shape: f32[2,2,128], index: 1, kind: input, shape index: {}, may-alias: {1,3}]   ;;  %s137_s2 = inlined_call_operand.vmem [shape: f32[2,128], index: 2, kind: input, shape index: {}]   ;;  %s138_s3 = inlined_call_operand.hbm [shape: f32[2,2,128], index: 3, kind: output, shape index: {}, may-alias: {1,3}]  }
   0x1   :  { %10 = vsyncpa [#allocation5], 0  ;;  %s102_s12 = smov [#allocation3]  }
   0x2   :  { %s18_s13 = sshll.u32 %s102_s12, 4  ;;  %s19_s13 = int_to_ptr.vmem [resolvable:$true] %s18_s13 }
   0x3   :  { %s66_s14 = scalar_lea.vmem %s19_s13, 64  ;;  %p71_p1 = scmp.lt.s32.totalorder %s19_s13, %s19_s13 }
   0x4   :  { %p67_p0 = scmp.ne.s32.totalorder %s19_s13, %s66_s14  ;;  %p72_p2 = scmp.lt.s32.totalorder %s66_s14, %s66_s14 }
   0x6   :  { %p73_p3 = por %p72_p2, %p71_p1 }
   0x8   :  { %p74_p4 = pnand %p73_p3, %p67_p0 }
   0xa   :  { %77 = shalt.err (!%p74_p4)
}
   0xb   :  { %s103_s0 = smov 32   ;;  %s104_s15 = smov 2  }
   0xc   :  { %24 = dma.hbm_to_vmem [thread:$0]  %s136_s1, 64, %s19_s13, [#allocation4], %s103_s0, %s103_s0, %s104_s15  }
   0xd   :  { %98 = dma.done.wait [#allocation4], 64  }
   0xe   :  { %99 = vsyncadd [#allocation4], 4294967232  ;;  %s105_s18 = smov [#allocation6]   ;;  %v30_v0 = vld [vmem:[#allocation3] sm:$0x3] }
   0xf   :  { %s42_s19 = sshll.u32 %s105_s18, 4  ;;  %v32_v1 = vld [vmem:[%s137_s2] sm:$0x3]  ;;  %v31_v2 = vld [vmem:[#allocation3 + $0x2] sm:$0x3]  ;;  %s43_s19 = int_to_ptr.vmem [resolvable:$true] %s42_s19 }
  0x10   :  { %v33_v3 = vadd.f32 %v32_v1, %v30_v0  ;;  %v34_v4 = vadd.f32 %v32_v1, %v31_v2  ;;  %s78_s22 = scalar_lea.vmem %s43_s19, 64  ;;  %p83_p6 = scmp.lt.s32.totalorder %s43_s19, %s43_s19 }
  0x11   :  { %p79_p5 = scmp.ne.s32.totalorder %s43_s19, %s78_s22  ;;  %p84_p7 = scmp.lt.s32.totalorder %s78_s22, %s78_s22 }
  0x12   :  { %35 = vst [vmem:[#allocation6] sm:$0x3] %v33_v3  ;;  %36 = vst [vmem:[#allocation6 + $0x2] sm:$0x3] %v34_v4 }
  0x13   :  { %p85_p8 = por %p84_p7, %p83_p6 }
  0x15   :  { %p86_p9 = pnand %p85_p8, %p79_p5 }
  0x17   :  { %89 = shalt.err (!%p86_p9)
}
  0x18   :  { %48 = dma.vmem_to_hbm [thread:$0]  %s43_s19, 64, %s138_s3, [#allocation5], %s103_s0, %s103_s0, %s104_s15  }
  0x19   :  { %100 = dma.done.wait [#allocation5], 64  }
  0x1a   :  { %101 = vsyncadd [#allocation5], 4294967232 }
  0x1b   :  { %52 = vsyncpa [#allocation4], 1 }
  0x1c   :  { %53 = vsyncpa [#allocation5], 1 }

</bundles_post_ra>
